<compile_context>
chip_gen: v6e
topology: v6e:2x2x1
jax: 0.10.0
libtpu: 0.0.40
codegen_flags: <defaults>
</compile_context>

<pallas_src>
import functools

import jax
import jax.numpy as jnp
import numpy as np
from jax.experimental import pallas as pl
from jax.experimental.pallas import tpu as pltpu

_MIB = 1 << 20


def _make_first_sine_kernel(w0):
    w0 = float(w0)

    def kernel(x_ref, o_ref):
        # Compute in f32 on the VPU, store back in the output dtype.
        x = x_ref[...].astype(jnp.float32)
        # TODO(synk): if profiling shows this is VALU-bound on v7x, replace
        # jnp.sin with a one-step Cody-Waite reduction + odd polynomial that
        # exploits the SIREN first-layer domain (|w0*x| <= 20); the generic
        # module makes no such domain guarantee, so keep exact jnp.sin here.
        o_ref[...] = jnp.sin(w0 * x).astype(o_ref.dtype)

    return kernel


def _default_block_bytes():
    """Per-array block byte target by TPU generation (trace-time query)."""
    kind = ""
    try:
        kind = jax.devices()[0].device_kind.lower()
    except Exception:
        pass
    if "v5" in kind:
        # 2 MiB blocks -> 8 MiB double-buffered, fits v5e's 16 MiB default.
        return 2 * _MIB
    if "v6" in kind:
        # 4 MiB blocks -> 16 MiB double-buffered, fits v6e's 32 MiB default.
        return 4 * _MIB
    if "v7" in kind or "7x" in kind:
        # 8 MiB blocks amortize the ~0.35 us per-step overhead against
        # 3.2 TB/s HBM; vmem_limit_bytes is raised below (64 MiB physical).
        return 8 * _MIB
    return 4 * _MIB  # unknown generation: middle of the road.


def _round_up(x, m):
    return ((x + m - 1) // m) * m


def _pick_lane_width(n_main):
    """Largest lane-dense width (multiple of 128) dividing n_main."""
    for w in (1024, 512, 256, 128):
        if n_main % w == 0:
            return w
    return 128  # unreachable: n_main is a multiple of 128.


@functools.partial(jax.jit, static_argnames=("w0", "block_bytes"))
def first_sine(x, *, w0=20.0, block_bytes=None):
    """Elementwise sin(w0 * x); same shape/dtype as x."""
    orig_shape = x.shape
    n = 1
    for d in orig_shape:
        n *= int(d)
    itemsize = jnp.dtype(x.dtype).itemsize

    # Lane-dense main region; the <128-element remainder never hits the kernel.
    n_main = (n // 128) * 128
    if n_main == 0:
        # Tiny array: not worth a kernel launch.
        return jnp.sin(w0 * x.astype(jnp.float32)).astype(x.dtype)

    if block_bytes is None:
        block_bytes = _default_block_bytes()
    block_bytes = int(block_bytes)

    width = _pick_lane_width(n_main)
    rows = n_main // width

    # Sublane alignment: 8 rows for 32-bit, 16 for 16-bit, 32 for 8-bit dtypes.
    row_align = max(8, 8 * (4 // itemsize))

    bytes_per_row = width * itemsize
    tile_rows = max(row_align, (block_bytes // bytes_per_row) // row_align * row_align)

    if rows < 2 * row_align:
        # Single block equal to the full array dims (legal even for <8 rows).
        tile_rows = rows
    else:
        # Guarantee >=2 blocks so megacore parts can shard the parallel axis,
        # while keeping the tile a multiple of the sublane alignment.
        half = _round_up((rows + 1) // 2, row_align)
        tile_rows = min(tile_rows, half)
        tile_rows = max(row_align, (tile_rows // row_align) * row_align)

    grid = pl.cdiv(rows, tile_rows)

    x_flat = x.reshape(-1)
    x_main = x_flat[:n_main].reshape(rows, width)

    block_vmem = tile_rows * width * itemsize
    # 2 arrays x 2 pipeline buffers x block, plus headroom for internal scratch.
    vmem_limit = min(max(4 * block_vmem + 8 * _MIB, 16 * _MIB), 48 * _MIB)

    out_main = pl.pallas_call(
        _make_first_sine_kernel(w0),
        out_shape=jax.ShapeDtypeStruct((rows, width), x.dtype),
        grid_spec=pltpu.PrefetchScalarGridSpec(
            num_scalar_prefetch=0,
            grid=(grid,),
            in_specs=[pl.BlockSpec((tile_rows, width), lambda i: (i, 0))],
            out_specs=pl.BlockSpec((tile_rows, width), lambda i: (i, 0)),
        ),
        compiler_params=pltpu.CompilerParams(
            dimension_semantics=("parallel",),
            vmem_limit_bytes=int(vmem_limit),
        ),
        cost_estimate=pl.CostEstimate(
            flops=20 * n_main,           # sin lowers to a ~20-op VPU polynomial
            transcendentals=0,           # not an EUP primitive on TPU
            bytes_accessed=2 * n_main * itemsize,
        ),
    )(x_main)

    if n_main == n:
        return out_main.reshape(orig_shape)

    # Ragged tail (<128 elements): plain jnp.sin, then stitch back together.
    tail = jnp.sin(w0 * x_flat[n_main:].astype(jnp.float32)).astype(x.dtype)
    return jnp.concatenate([out_main.reshape(-1), tail]).reshape(orig_shape)


if __name__ == "__main__":
    key = jax.random.PRNGKey(0)
    W0 = 20.0

    # Main case: 2*4*16*16 = 2048 elements -> lane-dense (2, 1024) view.
    x = jax.random.uniform(key, (2, 4, 16, 16), dtype=jnp.float32,
                           minval=-1.0, maxval=1.0)
    out = jax.block_until_ready(first_sine(x, w0=W0))
    ref = jnp.sin(W0 * x)
    np.testing.assert_allclose(np.asarray(out), np.asarray(ref),
                               atol=1e-5, rtol=1e-5)
    assert out.shape == x.shape and out.dtype == x.dtype

    # Ragged case: 17*131 = 2227 elements -> 2176-element kernel region
    # (multi-block grid with a masked last block) + 51-element jnp.sin tail.
    x_rag = jax.random.uniform(jax.random.PRNGKey(1), (17, 131),
                               dtype=jnp.float32, minval=-2.0, maxval=2.0)
    out_rag = jax.block_until_ready(first_sine(x_rag, w0=W0))
    np.testing.assert_allclose(np.asarray(out_rag),
                               np.asarray(jnp.sin(W0 * x_rag)),
                               atol=1e-5, rtol=1e-5)

    # Tiny odd case: 3*5*7 = 105 < 128 elements -> pure jnp.sin fallback.
    x_odd = jax.random.uniform(jax.random.PRNGKey(2), (3, 5, 7),
                               dtype=jnp.float32, minval=-1.0, maxval=1.0)
    out_odd = jax.block_until_ready(first_sine(x_odd, w0=W0))
    np.testing.assert_allclose(np.asarray(out_odd),
                               np.asarray(jnp.sin(W0 * x_odd)),
                               atol=1e-5, rtol=1e-5)

    # bf16 case: exercises the itemsize-scaled sublane alignment path.
    x_bf16 = jax.random.uniform(jax.random.PRNGKey(3), (8, 256),
                                dtype=jnp.bfloat16, minval=-1.0, maxval=1.0)
    out_bf16 = jax.block_until_ready(first_sine(x_bf16, w0=W0))
    ref_bf16 = jnp.sin(W0 * x_bf16.astype(jnp.float32)).astype(jnp.bfloat16)
    np.testing.assert_allclose(np.asarray(out_bf16, dtype=np.float32),
                               np.asarray(ref_bf16, dtype=np.float32),
                               atol=2e-2, rtol=2e-2)
    assert out_bf16.dtype == x_bf16.dtype

    print("KERNEL_OK")
</pallas_src>

<mosaic_0001>
module attributes {stable_mosaic.version = 11 : i64} {
  func.func @kernel(%arg0: i32, %arg1: memref<2x1024xf32, #tpu.memory_space<vmem>>, %arg2: memref<2x1024xf32, #tpu.memory_space<vmem>>) attributes {dimension_semantics = [#tpu.dimension_semantics<parallel>], iteration_bounds = array<i64: 1>, scalar_prefetch = 0 : i64, scratch_operands = 0 : i64, tpu.core_type = #tpu.core_type<tc>, window_params = [{transform_indices = @transform_0, window_bounds = array<i64: 2, 1024>}, {transform_indices = @transform_1, window_bounds = array<i64: 2, 1024>}]} {
    %c0 = arith.constant 0 : index
    %c0_0 = arith.constant 0 : index
    %0 = vector.load %arg1[%c0, %c0_0] : memref<2x1024xf32, #tpu.memory_space<vmem>>, vector<2x1024xf32>
    %cst = arith.constant 2.000000e+01 : f32
    %1 = vector.broadcast %cst : f32 to vector<2x1024xf32>
    %2 = arith.mulf %1, %0 : vector<2x1024xf32>
    %3 = math.sin %2 : vector<2x1024xf32>
    %c0_1 = arith.constant 0 : index
    %c0_2 = arith.constant 0 : index
    %4 = vector.load %arg2[%c0_1, %c0_2] : memref<2x1024xf32, #tpu.memory_space<vmem>>, vector<2x1024xf32>
    tpu.vector_store %arg2[%c0_1, %c0_2], %3 {strides = array<i32>} : memref<2x1024xf32, #tpu.memory_space<vmem>>, vector<2x1024xf32>,
    return
  }
  func.func @transform_0(%arg0: i32) -> (i32, i32) {
    %c0_i32 = arith.constant 0 : i32
    %c0_i32_0 = arith.constant 0 : i32
    return %arg0, %c0_i32 : i32, i32
  }
  func.func @transform_1(%arg0: i32) -> (i32, i32) {
    %c0_i32 = arith.constant 0 : i32
    %c0_i32_0 = arith.constant 0 : i32
    return %arg0, %c0_i32 : i32, i32
  }
}

</mosaic_0001>

<bundles_post_ra>
// kernel: first_sine.1
= control target key start
LH: loop header
LB: loop body
LE: loop exit
PB: predicated region body
PF: predicated region fallthrough
CT: control target
= control target key end

     0   :  { %v256_v26 = vmov 683565275   ;;  %v257_v28 = vmov 2475754826   ;;  %v258_v30 = vmov 2131351028   ;;  %s362_s0 = inlined_call_operand.vmem [shape: f32[2,1024], index: 0, kind: input, shape index: {}]   ;;  %s363_s1 = inlined_call_operand.vmem [shape: f32[2,1024], index: 1, kind: output, shape index: {}]  }
   0x1   :  { %v8_v0 = vld [vmem:[%s362_s0] sm:$0xff]  ;;  %v9_v1 = vld [vmem:[%s362_s0 + $0x8] sm:$0xff]  ;;  %v259_v32 = vmov 2102212464   ;;  %v260_v34 = vmov 920167782  }
   0x2   :  { %v278_v2 = vmul.f32 20.0, %v8_v0  ;;  %v280_v3 = vmul.f32 20.0, %v9_v1  ;;  %v261_v42 = vmov 1326507024  }
   0x4   :  { %v12_v4 = vand.u32 2147483647, %v278_v2  ;;  %v15_v5 = vand.u32 2139095040, %v278_v2  ;;  %v116_v6 = vand.u32 2147483647, %v280_v3  ;;  %v119_v7 = vand.u32 2139095040, %v280_v3 }
   0x5   :  { %vm14_vm14 = vcmp.lt.s32.totalorder %v278_v2, 0 }
   0x6   :  { %v16_v8 = vshrl.u32 %v15_v5, 23  ;;  %v19_v9 = vand.u32 8388607, %v12_v4  ;;  %v120_v10 = vshrl.u32 %v119_v7, 23  ;;  %v123_v11 = vand.u32 8388607, %v116_v6 }
   0x7   :  { %vm341_vm15 = vcmp.le.f32.partialorder %v12_v4, 0.7853982 }
   0x8   :  { %v226_v12 = vadd.s32 4294967169, %v16_v8  ;;  %v230_v13 = vadd.s32 4294967169, %v120_v10  ;;  %v20_v15 = vor.u32 8388608, %v19_v9  ;;  %v124_v16 = vor.u32 8388608, %v123_v11 }
   0xa   :  { %v22_v14 = vadd.s32 1, %v226_v12  ;;  %v126_v17 = vadd.s32 1, %v230_v13  ;;  %v290_v22 = vshll.u32 %v20_v15, 8  ;;  %v292_v24 = vshll.u32 %v124_v16, 8 }
   0xc   :  { %vm23_vm0 = vcmp.gt.s32.totalorder %v22_v14, 0  ;;  %vm127_vm1 = vcmp.gt.s32.totalorder %v126_v17, 0 }
   0xd   :  { %v24_v18 = vsel %vm23_vm0, %v22_v14, 0  ;;  %v128_v21 = vsel %vm127_vm1, %v126_v17, 0  ;;  %vm118_vm0 = vcmp.lt.s32.totalorder %v280_v3, 0  ;;  %vm117_vm1 = vcmp.le.f32.partialorder %v116_v6, 0.7853982 }
   0xe   :  { %v25_v19 = vshrl.u32 %v24_v18, 5  ;;  %v26_v20 = vand.u32 31, %v24_v18  ;;  %v130_v23 = vand.u32 31, %v128_v21  ;;  %v294_v36 = vshrl.u32 %v128_v21, 5 }
  0x10   :  { %v27_v25 = vsub.s32 32, %v26_v20  ;;  %v29_v27 = vshll.u32 %v256_v26, %v26_v20  ;;  %v32_v29 = vshll.u32 %v257_v28, %v26_v20  ;;  %v35_v31 = vshll.u32 %v258_v30, %v26_v20 }
  0x11   :  { %v38_v33 = vshll.u32 %v259_v32, %v26_v20  ;;  %v41_v35 = vshll.u32 %v260_v34, %v26_v20  ;;  %vm44_vm2 = vcmp.lt.s32.totalorder %v25_v19, 1  ;;  %vm45_vm3 = vcmp.lt.s32.totalorder %v25_v19, 2 }
  0x12   :  { %v28_v37 = vshrl.u32 %v256_v26, %v27_v25  ;;  %v30_v38 = vshrl.u32 %v257_v28, %v27_v25  ;;  %v33_v39 = vshrl.u32 %v258_v30, %v27_v25  ;;  %v36_v40 = vshrl.u32 %v259_v32, %v27_v25 }
  0x13   :  { %v39_v41 = vshrl.u32 %v260_v34, %v27_v25  ;;  %v42_v43 = vshrl.u32 %v261_v42, %v27_v25  ;;  %vm47_vm4 = vcmp.lt.s32.totalorder %v25_v19, 4  ;;  %v131_v47 = vsub.s32 32, %v130_v23 }
  0x14   :  { %v31_v44 = vor.u32 %v30_v38, %v29_v27  ;;  %v34_v45 = vor.u32 %v33_v39, %v32_v29  ;;  %v37_v46 = vor.u32 %v36_v40, %v35_v31  ;;  %vm46_vm5 = vcmp.lt.s32.totalorder %v25_v19, 3 }
  0x15   :  { %v40_v48 = vor.u32 %v39_v41, %v38_v33  ;;  %v43_v49 = vor.u32 %v42_v43, %v41_v35  ;;  %v133_v50 = vshll.u32 %v256_v26, %v130_v23  ;;  %v136_v58 = vshll.u32 %v257_v28, %v130_v23 }
  0x16   :  { %v48_v51 = vsel %vm44_vm2, %v28_v37, %v31_v44  ;;  %v49_v52 = vsel %vm47_vm4, %v37_v46, 2102212464  ;;  %v52_v53 = vsel %vm44_vm2, %v31_v44, %v34_v45  ;;  %v56_v54 = vsel %vm44_vm2, %v34_v45, %v37_v46 }
  0x17   :  { %v50_v55 = vsel %vm46_vm5, %v34_v45, %v49_v52  ;;  %v53_v56 = vsel %vm47_vm4, %v40_v48, 920167782  ;;  %v57_v57 = vsel %vm47_vm4, %v43_v49, 1326507024  ;;  %v132_v61 = vshrl.u32 %v256_v26, %v131_v47 }
  0x18   :  { %v54_v59 = vsel %vm46_vm5, %v37_v46, %v53_v56  ;;  %v58_v60 = vsel %vm46_vm5, %v40_v48, %v57_v57  ;;  %v134_v62 = vshrl.u32 %v257_v28, %v131_v47  ;;  %v51_v63 = vsel %vm45_vm3, %v48_v51, %v50_v55 }
  0x19   :  { %v55_v0 = vsel %vm45_vm3, %v52_v53, %v54_v59  ;;  %v59_v1 = vsel %vm45_vm3, %v56_v54, %v58_v60  ;;  %v137_v5 = vshrl.u32 %v258_v30, %v131_v47  ;;  %v139_v13 = vshll.u32 %v258_v30, %v130_v23 }
  0x1a   :  { %v303_v7 = vmul.u32.u64.low %v290_v22, %v59_v1  ;;  %v304_v8 = vmul.u32.u64.high %v290_v22, %v59_v1, %v303_v7  ;;  %v307_v9 = vmul.u32.u64.low %v290_v22, %v55_v0  ;;  %v308_v10 = vmul.u32.u64.high %v290_v22, %v55_v0, %v307_v9 }
  0x1b   :  { %v135_v11 = vor.u32 %v134_v62, %v133_v50  ;;  %v138_v12 = vor.u32 %v137_v5, %v136_v58  ;;  %v140_v14 = vshrl.u32 %v259_v32, %v131_v47  ;;  %v142_v15 = vshll.u32 %v259_v32, %v130_v23 }
  0x1c   :  { %v143_v16 = vshrl.u32 %v260_v34, %v131_v47  ;;  %v145_v17 = vshll.u32 %v260_v34, %v130_v23  ;;  %v146_v18 = vshrl.u32 %v261_v42, %v131_v47  ;;  %v67_v19 = vmul.u32 %v290_v22, %v51_v63 }
  0x1d   :  { %v141_v20 = vor.u32 %v140_v14, %v139_v13  ;;  %vm148_vm6 = vcmp.lt.s32.totalorder %v294_v36, 1  ;;  %vm149_vm7 = vcmp.lt.s32.totalorder %v294_v36, 2  ;;  %vm69_vm8 = vc.u32 %v304_v8, %v307_v9 }
  0x1e   :  { %v70_v21 = vadd.s32 1, %v308_v10  ;;  %v144_v25 = vor.u32 %v143_v16, %v142_v15  ;;  %vm150_vm9 = vcmp.lt.s32.totalorder %v294_v36, 3  ;;  %v147_v26 = vor.u32 %v146_v18, %v145_v17 }
  0x1f   :  { %vm151_vm10 = vcmp.lt.s32.totalorder %v294_v36, 4  ;;  %v152_v27 = vsel %vm148_vm6, %v132_v61, %v135_v11  ;;  %v156_v23 = vsel %vm148_vm6, %v135_v11, %v138_v12  ;;  %v160_v30 = vsel %vm148_vm6, %v138_v12, %v141_v20 }
  0x20   :  { %v71_v28 = vsel %vm69_vm8, %v70_v21, %v308_v10  ;;  %v153_v22 = vsel %vm151_vm10, %v141_v20, 2102212464  ;;  %v157_v29 = vsel %vm151_vm10, %v144_v25, 920167782  ;;  %v161_v34 = vsel %vm151_vm10, %v147_v26, 1326507024 }
  0x21   :  { %v72_v31 = vadd.s32 %v71_v28, %v67_v19  ;;  %v154_v32 = vsel %vm150_vm9, %v138_v12, %v153_v22  ;;  %v158_v33 = vsel %vm150_vm9, %v141_v20, %v157_v29  ;;  %v162_v38 = vsel %vm150_vm9, %v144_v25, %v161_v34 }
  0x22   :  { %v155_v35 = vsel %vm149_vm7, %v152_v27, %v154_v32  ;;  %v159_v37 = vsel %vm149_vm7, %v156_v23, %v158_v33  ;;  %v163_v40 = vsel %vm149_vm7, %v160_v30, %v162_v38  ;;  %v68_v59 = vadd.s32 %v307_v9, %v304_v8 }
  0x23   :  { %v73_v39 = vadd.s32 536870912, %v72_v31  ;;  %v325_v41 = vmul.u32.u64.low %v292_v24, %v159_v37  ;;  %v326_v42 = vmul.u32.u64.high %v292_v24, %v159_v37, %v325_v41  ;;  %v171_v46 = vmul.u32 %v292_v24, %v155_v35 }
  0x24   :  { %v329_v43 = vmul.u32.u64.low %v292_v24, %v163_v40  ;;  %v330_v44 = vmul.u32.u64.high %v292_v24, %v163_v40, %v329_v43  ;;  %vm104_vm5 = vweird.f32 %v278_v2  ;;  %vm208_vm9 = vweird.f32 %v280_v3 }
  0x25   :  { %v74_v45 = vshrl.u32 %v73_v39, 30  ;;  %v174_v48 = vadd.s32 1, %v326_v42 }
  0x26   :  { %vm173_vm11 = vc.u32 %v330_v44, %v325_v41  ;;  %v172_v15 = vadd.s32 %v325_v41, %v330_v44 }
  0x27   :  { %v75_v47 = vshll.u32 %v74_v45, 30  ;;  %v175_v36 = vsel %vm173_vm11, %v174_v48, %v326_v42  ;;  %v98_v20 = vsub.s32 4, %v74_v45 }
  0x28   :  { %v176_v50 = vadd.s32 %v175_v36, %v171_v46 }
  0x29   :  { %v76_v49 = vsub.s32 %v72_v31, %v75_v47  ;;  %v99_v29 = vsel %vm14_vm14, %v98_v20, %v74_v45 }
  0x2a   :  { %v177_v52 = vadd.s32 536870912, %v176_v50  ;;  %v101_v4 = vsel %vm341_vm15, 0, %v99_v29 }
  0x2b   :  { %v78_v51 = vsub.s32 0, %v76_v49  ;;  %v105_v37 = vadd.s32 3, %v101_v4 }
  0x2c   :  { %v178_v54 = vshrl.u32 %v177_v52, 30 }
  0x2d   :  { %v227_v53 = vmin.u32 %v78_v51, %v76_v49  ;;  %v106_v42 = vand.u32 3, %v105_v37 }
  0x2e   :  { %v179_v56 = vshll.u32 %v178_v54, 30  ;;  %v202_v35 = vsub.s32 4, %v178_v54 }
  0x2f   :  { %v80_v55 = vclz %v227_v53  ;;  %vm111_vm2 = vcmp.eq.s32.totalorder %v106_v42, 2  ;;  %vm108_vm3 = vcmp.eq.s32.totalorder %v106_v42, 0  ;;  %vm107_vm4 = vcmp.lt.s32.totalorder %v106_v42, 2 }
  0x30   :  { %v180_v58 = vsub.s32 %v176_v50, %v179_v56  ;;  %v203_v40 = vsel %vm118_vm0, %v202_v35, %v178_v54 }
  0x31   :  { %v228_v57 = vadd.s32 4294967294, %v80_v55  ;;  %v205_v43 = vsel %vm117_vm1, 0, %v203_v40 }
  0x32   :  { %v182_v60 = vsub.s32 0, %v180_v58  ;;  %v209_v47 = vadd.s32 3, %v205_v43 }
  0x33   :  { %vm229_vm12 = vcmp.lt.s32.totalorder %v228_v57, 0 }
  0x34   :  { %v83_v24 = vsel %vm229_vm12, 0, %v228_v57  ;;  %v231_v0 = vmin.u32 %v182_v60, %v180_v58  ;;  %v210_v50 = vand.u32 3, %v209_v47 }
  0x35   :  { %v84_v61 = vsub.s32 32, %v83_v24  ;;  %v85_v62 = vshll.u32 %v76_v49, %v83_v24  ;;  %v88_v63 = vsub.s32 4294967266, %v83_v24 }
  0x36   :  { %v184_v7 = vclz %v231_v0  ;;  %vm215_vm6 = vcmp.eq.s32.totalorder %v210_v50, 2  ;;  %vm212_vm7 = vcmp.eq.s32.totalorder %v210_v50, 0  ;;  %vm211_vm8 = vcmp.lt.s32.totalorder %v210_v50, 2 }
  0x37   :  { %v86_v1 = vshrl.u32 %v68_v59, %v84_v61  ;;  %v89_v5 = vadd.s32 127, %v88_v63 }
  0x38   :  { %v232_v12 = vadd.s32 4294967294, %v184_v7 }
  0x39   :  { %v87_v10 = vor.u32 %v86_v1, %v85_v62  ;;  %v90_v11 = vshll.u32 %v89_v5, 23 }
  0x3a   :  { %vm233_vm13 = vcmp.lt.s32.totalorder %v232_v12, 0 }
  0x3b   :  { %v91_v13 = vor.u32 4788187, %v90_v11  ;;  %v94_v14 = vcvt.s32.f32 %v87_v10  ;;  %v187_v8 = vsel %vm233_vm13, 0, %v232_v12 }
  0x3c   :  { %v188_v9 = vsub.s32 32, %v187_v8  ;;  %v189_v17 = vshll.u32 %v180_v58, %v187_v8  ;;  %v192_v18 = vsub.s32 4294967266, %v187_v8 }
  0x3d   :  { %v92_v16 = vand.u32 2147483647, %v91_v13 }
  0x3e   :  { %v190_v21 = vshrl.u32 %v172_v15, %v188_v9  ;;  %v193_v25 = vadd.s32 127, %v192_v18 }
  0x3f   :  { %v95_v19 = vmul.f32 %v94_v14, %v92_v16 }
  0x40   :  { %v191_v23 = vor.u32 %v190_v21, %v189_v17  ;;  %v194_v28 = vshll.u32 %v193_v25, 23 }
  0x41   :  { %v96_v27 = vxor.u32 2147483648, %v95_v19 }
  0x42   :  { %v195_v31 = vor.u32 4788187, %v194_v28  ;;  %v198_v32 = vcvt.s32.f32 %v191_v23 }
  0x43   :  { %v97_v22 = vsel %vm14_vm14, %v96_v27, %v95_v19 }
  0x44   :  { %v100_v30 = vsel %vm341_vm15, %v278_v2, %v97_v22  ;;  %v196_v33 = vand.u32 2147483647, %v195_v31 }
  0x45   :  { %248 = vcosq.f32 %v100_v30 }
  0x46   :  { %250 = vsinq.f32 %v100_v30  ;;  %v199_v34 = vmul.f32 %v198_v32, %v196_v33 }
  0x48   :  { %v200_v38 = vxor.u32 2147483648, %v199_v34 }
  0x4a   :  { %v201_v39 = vsel %vm118_vm0, %v200_v38, %v199_v34 }
  0x4b   :  { %v204_v41 = vsel %vm117_vm1, %v280_v3, %v201_v39 }
  0x4c   :  { %252 = vcosq.f32 %v204_v41 }
  0x4d   :  { %254 = vsinq.f32 %v204_v41 }
  0x52   :  { %v249_v44 = vpop.eup %248 }
  0x53   :  { %v251_v45 = vpop.eup %250  ;;  %v112_v46 = vxor.u32 2147483648, %v249_v44 }
  0x54   :  { %v109_v48 = vxor.u32 2147483648, %v251_v45 }
  0x55   :  { %v113_v6 = vsel %vm111_vm2, %v112_v46, %v251_v45 }
  0x56   :  { %v110_v49 = vsel %vm108_vm3, %v249_v44, %v109_v48 }
  0x57   :  { %v114_v36 = vsel %vm107_vm4, %v110_v49, %v113_v6 }
  0x58   :  { %v115_v51 = vsel %vm104_vm5, nan, %v114_v36 }
  0x59   :  { %220 = vst [vmem:[%s363_s1] sm:$0xff] %v115_v51  ;;  %v253_v52 = vpop.eup %252 }
  0x5a   :  { %v255_v53 = vpop.eup %254  ;;  %v216_v54 = vxor.u32 2147483648, %v253_v52 }
  0x5b   :  { %v213_v55 = vxor.u32 2147483648, %v255_v53 }
  0x5c   :  { %v217_v56 = vsel %vm215_vm6, %v216_v54, %v255_v53 }
  0x5d   :  { %v214_v2 = vsel %vm212_vm7, %v253_v52, %v213_v55 }
  0x5e   :  { %v218_v57 = vsel %vm211_vm8, %v214_v2, %v217_v56 }
  0x5f   :  { %v219_v58 = vsel %vm208_vm9, nan, %v218_v57 }
  0x60   :  { %221 = vst [vmem:[%s363_s1 + $0x8] sm:$0xff] %v219_v58 }

</bundles_post_ra>
